<compile_context>
chip_gen: v7x
topology: tpu7x:2x2x1
jax: 0.10.0
libtpu: 0.0.40
codegen_flags: <defaults>
</compile_context>

<pallas_src>
import jax
import jax.numpy as jnp
from jax.experimental import pallas as pl
from jax.experimental.pallas import tpu as pltpu

# ---------------- problem configuration (small synthetic sizes) --------------
SEQ = 8
BATCH = 4
IN_DIM = 8
HIDDEN = 32          # 4 * HIDDEN = 128 -> the gate block exactly fills a vreg lane dim


# ------------------------------- Pallas kernel --------------------------------
def lstm_kernel(x_ref, h0_ref, c0_ref, w_ref, y_ref, h_ref, c_ref):
    """One grid step == one LSTM time step.

    x_ref  : [1, B, IN]      this time step's input slice (pipelined per step)
    h0_ref : [B, H]          initial hidden state (read only at t == 0)
    c0_ref : [B, H]          initial cell state   (read only at t == 0)
    w_ref  : [IN+H, 4H]      concat(W_ih.T, W_hh.T), resident across steps
    y_ref  : [1, B, H]       per-step output slice
    h_ref  : [B, H]          final hidden state; doubles as the running state
    c_ref  : [B, H]          final cell state;   doubles as the running state
    """
    t = pl.program_id(0)

    @pl.when(t == 0)
    def _():
        h_ref[...] = h0_ref[...]
        c_ref[...] = c0_ref[...]

    x_t = x_ref[0]              # [B, IN]
    h_prev = h_ref[...]         # [B, H]
    c_prev = c_ref[...]         # [B, H]

    # Full-width gate projection: all four gates in one 128-lane block,
    # two MXU passes (input part + recurrent part), no per-gate slicing of W.
    gates = (
        jnp.dot(x_t, w_ref[0:IN_DIM, :], preferred_element_type=jnp.float32)
        + jnp.dot(h_prev, w_ref[IN_DIM:IN_DIM + HIDDEN, :],
                  preferred_element_type=jnp.float32)
    )                           # [B, 4H]

    i_g = jax.nn.sigmoid(gates[:, 0 * HIDDEN:1 * HIDDEN])
    f_g = jax.nn.sigmoid(gates[:, 1 * HIDDEN:2 * HIDDEN])
    g_g = jnp.tanh(gates[:, 2 * HIDDEN:3 * HIDDEN])
    o_g = jax.nn.sigmoid(gates[:, 3 * HIDDEN:4 * HIDDEN])

    c_new = f_g * c_prev + i_g * g_g
    h_new = o_g * jnp.tanh(c_new)

    c_ref[...] = c_new
    h_ref[...] = h_new
    y_ref[0] = h_new            # single lane-dense [B, H] store per step


# ---------------------------------- wrapper ------------------------------------
def depth_forward(x, h, c, w_ih, w_hh):
    """x: [S, B, IN], h/c: [1, B, H], w_ih: [4H, IN], w_hh: [4H, H]."""
    seq, b, in_dim = x.shape
    hidden = h.shape[-1]

    # One consolidated, pre-transposed parameter tensor -> single resident DMA.
    w_cat = jnp.concatenate([w_ih.T, w_hh.T], axis=0)       # [IN+H, 4H]

    grid_spec = pltpu.PrefetchScalarGridSpec(
        num_scalar_prefetch=0,
        grid=(seq,),
        in_specs=[
            pl.BlockSpec((1, b, in_dim), lambda t: (t, 0, 0)),          # x_t
            pl.BlockSpec((b, hidden), lambda t: (0, 0)),                # h0 (resident)
            pl.BlockSpec((b, hidden), lambda t: (0, 0)),                # c0 (resident)
            pl.BlockSpec((in_dim + hidden, 4 * hidden), lambda t: (0, 0)),  # weights (resident)
        ],
        out_specs=[
            pl.BlockSpec((1, b, hidden), lambda t: (t, 0, 0)),          # y_t
            pl.BlockSpec((b, hidden), lambda t: (0, 0)),                # h_n (state)
            pl.BlockSpec((b, hidden), lambda t: (0, 0)),                # c_n (state)
        ],
    )

    y, h_n, c_n = pl.pallas_call(
        lstm_kernel,
        out_shape=(
            jax.ShapeDtypeStruct((seq, b, hidden), jnp.float32),
            jax.ShapeDtypeStruct((b, hidden), jnp.float32),
            jax.ShapeDtypeStruct((b, hidden), jnp.float32),
        ),
        grid_spec=grid_spec,
        # The time axis carries the recurrence -> must be "arbitrary" (serial).
        compiler_params=pltpu.CompilerParams(dimension_semantics=("arbitrary",)),
    )(x, h.reshape(b, hidden), c.reshape(b, hidden), w_cat)

    return y, (h_n.reshape(1, b, hidden), c_n.reshape(1, b, hidden))


# ---------------------------- pure-JAX reference ------------------------------
def lstm_reference(x, h0, c0, w_ih, w_hh):
    def step(carry, x_t):
        h, c = carry
        gates = x_t @ w_ih.T + h @ w_hh.T
        i = jax.nn.sigmoid(gates[:, 0 * HIDDEN:1 * HIDDEN])
        f = jax.nn.sigmoid(gates[:, 1 * HIDDEN:2 * HIDDEN])
        g = jnp.tanh(gates[:, 2 * HIDDEN:3 * HIDDEN])
        o = jax.nn.sigmoid(gates[:, 3 * HIDDEN:4 * HIDDEN])
        c = f * c + i * g
        h = o * jnp.tanh(c)
        return (h, c), h

    (h_n, c_n), ys = jax.lax.scan(step, (h0[0], c0[0]), x)
    return ys, (h_n[None], c_n[None])


# ----------------------------------- main -------------------------------------
if __name__ == "__main__":
    key = jax.random.PRNGKey(0)
    k_x, k_h, k_c, k_wih, k_whh = jax.random.split(key, 5)

    x = jax.random.normal(k_x, (SEQ, BATCH, IN_DIM), jnp.float32)
    h0 = jax.random.normal(k_h, (1, BATCH, HIDDEN), jnp.float32)
    c0 = jax.random.normal(k_c, (1, BATCH, HIDDEN), jnp.float32)

    # PyTorch-style LSTM init: U(-1/sqrt(hidden), 1/sqrt(hidden)), gate order i|f|g|o.
    scale = 1.0 / (HIDDEN ** 0.5)
    w_ih = jax.random.uniform(k_wih, (4 * HIDDEN, IN_DIM), jnp.float32, -scale, scale)
    w_hh = jax.random.uniform(k_whh, (4 * HIDDEN, HIDDEN), jnp.float32, -scale, scale)

    y, (h_n, c_n) = depth_forward(x, h0, c0, w_ih, w_hh)
    y = jax.block_until_ready(y)

    y_ref, (h_n_ref, c_n_ref) = lstm_reference(x, h0, c0, w_ih, w_hh)

    assert y.shape == (SEQ, BATCH, HIDDEN)
    assert h_n.shape == (1, BATCH, HIDDEN) and c_n.shape == (1, BATCH, HIDDEN)
    assert jnp.allclose(y, y_ref, atol=1e-4, rtol=1e-4), "y mismatch vs JAX reference"
    assert jnp.allclose(h_n, h_n_ref, atol=1e-4, rtol=1e-4), "h_n mismatch vs JAX reference"
    assert jnp.allclose(c_n, c_n_ref, atol=1e-4, rtol=1e-4), "c_n mismatch vs JAX reference"

    print("KERNEL_OK")
</pallas_src>

<mosaic_0001>
module attributes {stable_mosaic.version = 11 : i64} {
  func.func @lstm_kernel(%arg0: i32, %arg1: memref<1x4x8xf32, #tpu.memory_space<vmem>>, %arg2: memref<4x32xf32, #tpu.memory_space<vmem>>, %arg3: memref<4x32xf32, #tpu.memory_space<vmem>>, %arg4: memref<40x128xf32, #tpu.memory_space<vmem>>, %arg5: memref<1x4x32xf32, #tpu.memory_space<vmem>>, %arg6: memref<4x32xf32, #tpu.memory_space<vmem>>, %arg7: memref<4x32xf32, #tpu.memory_space<vmem>>) attributes {dimension_semantics = [#tpu.dimension_semantics<arbitrary>], iteration_bounds = array<i64: 8>, scalar_prefetch = 0 : i64, scratch_operands = 0 : i64, tpu.core_type = #tpu.core_type<tc>, window_params = [{transform_indices = @transform_0, window_bounds = array<i64: 1, 4, 8>}, {pipeline_mode = #tpu.pipeline_mode<synchronous>, transform_indices = @transform_1, window_bounds = array<i64: 4, 32>}, {pipeline_mode = #tpu.pipeline_mode<synchronous>, transform_indices = @transform_2, window_bounds = array<i64: 4, 32>}, {pipeline_mode = #tpu.pipeline_mode<synchronous>, transform_indices = @transform_3, window_bounds = array<i64: 40, 128>}, {transform_indices = @transform_4, window_bounds = array<i64: 1, 4, 32>}, {pipeline_mode = #tpu.pipeline_mode<synchronous>, transform_indices = @transform_5, window_bounds = array<i64: 4, 32>}, {pipeline_mode = #tpu.pipeline_mode<synchronous>, transform_indices = @transform_6, window_bounds = array<i64: 4, 32>}]} {
    %c0_i32 = arith.constant 0 : i32
    %0 = arith.cmpi eq, %arg0, %c0_i32 : i32
    %1 = arith.extui %0 : i1 to i32
    %c0_i32_0 = arith.constant 0 : i32
    %2 = arith.cmpi ne, %1, %c0_i32_0 : i32
    scf.if %2 {
      %c0_21 = arith.constant 0 : index
      %c0_22 = arith.constant 0 : index
      %42 = vector.load %arg2[%c0_21, %c0_22] : memref<4x32xf32, #tpu.memory_space<vmem>>, vector<4x32xf32>
      %c0_23 = arith.constant 0 : index
      %c0_24 = arith.constant 0 : index
      %43 = vector.load %arg6[%c0_23, %c0_24] : memref<4x32xf32, #tpu.memory_space<vmem>>, vector<4x32xf32>
      tpu.vector_store %arg6[%c0_23, %c0_24], %42 {strides = array<i32>} : memref<4x32xf32, #tpu.memory_space<vmem>>, vector<4x32xf32>,
      %c0_25 = arith.constant 0 : index
      %c0_26 = arith.constant 0 : index
      %44 = vector.load %arg3[%c0_25, %c0_26] : memref<4x32xf32, #tpu.memory_space<vmem>>, vector<4x32xf32>
      %c0_27 = arith.constant 0 : index
      %c0_28 = arith.constant 0 : index
      %45 = vector.load %arg7[%c0_27, %c0_28] : memref<4x32xf32, #tpu.memory_space<vmem>>, vector<4x32xf32>
      tpu.vector_store %arg7[%c0_27, %c0_28], %44 {strides = array<i32>} : memref<4x32xf32, #tpu.memory_space<vmem>>, vector<4x32xf32>,
    } else {
    }
    %c0 = arith.constant 0 : index
    %c0_1 = arith.constant 0 : index
    %c0_2 = arith.constant 0 : index
    %3 = vector.load %arg1[%c0, %c0_1, %c0_2] : memref<1x4x8xf32, #tpu.memory_space<vmem>>, vector<1x4x8xf32>
    %4 = vector.shape_cast %3 : vector<1x4x8xf32> to vector<4x8xf32>
    %c0_3 = arith.constant 0 : index
    %c0_4 = arith.constant 0 : index
    %5 = vector.load %arg6[%c0_3, %c0_4] : memref<4x32xf32, #tpu.memory_space<vmem>>, vector<4x32xf32>
    %c0_5 = arith.constant 0 : index
    %c0_6 = arith.constant 0 : index
    %6 = vector.load %arg7[%c0_5, %c0_6] : memref<4x32xf32, #tpu.memory_space<vmem>>, vector<4x32xf32>
    %c0_7 = arith.constant 0 : index
    %c0_8 = arith.constant 0 : index
    %7 = vector.load %arg4[%c0_7, %c0_8] : memref<40x128xf32, #tpu.memory_space<vmem>>, vector<8x128xf32>
    %cst = arith.constant dense<0.000000e+00> : vector<4x128xf32>
    %8 = tpu.matmul %4, %7, %cst {dimension_numbers = #tpu.dot_dimension_numbers<[1], [0], [0], [1], [0, 0, 1, 1], [], []>} : vector<4x8xf32>, vector<8x128xf32>, vector<4x128xf32> -> vector<4x128xf32>
    %c8 = arith.constant 8 : index
    %c0_9 = arith.constant 0 : index
    %9 = vector.load %arg4[%c8, %c0_9] : memref<40x128xf32, #tpu.memory_space<vmem>>, vector<32x128xf32>
    %cst_10 = arith.constant dense<0.000000e+00> : vector<4x128xf32>
    %10 = tpu.matmul %5, %9, %cst_10 {dimension_numbers = #tpu.dot_dimension_numbers<[1], [0], [0], [1], [0, 0, 1, 1], [], []>} : vector<4x32xf32>, vector<32x128xf32>, vector<4x128xf32> -> vector<4x128xf32>
    %11 = arith.addf %8, %10 : vector<4x128xf32>
    %12 = vector.extract_strided_slice %11 {offsets = [0, 0], sizes = [4, 32], strides = [1, 1]} : vector<4x128xf32> to vector<4x32xf32>
    %13 = arith.negf %12 : vector<4x32xf32>
    %14 = math.exp %13 : vector<4x32xf32>
    %cst_11 = arith.constant 1.000000e+00 : f32
    %15 = vector.broadcast %cst_11 : f32 to vector<4x32xf32>
    %16 = arith.addf %15, %14 : vector<4x32xf32>
    %17 = arith.divf %15, %16 : vector<4x32xf32>
    %18 = vector.extract_strided_slice %11 {offsets = [0, 32], sizes = [4, 32], strides = [1, 1]} : vector<4x128xf32> to vector<4x32xf32>
    %19 = arith.negf %18 : vector<4x32xf32>
    %20 = math.exp %19 : vector<4x32xf32>
    %cst_12 = arith.constant 1.000000e+00 : f32
    %21 = vector.broadcast %cst_12 : f32 to vector<4x32xf32>
    %22 = arith.addf %21, %20 : vector<4x32xf32>
    %23 = arith.divf %21, %22 : vector<4x32xf32>
    %24 = vector.extract_strided_slice %11 {offsets = [0, 64], sizes = [4, 32], strides = [1, 1]} : vector<4x128xf32> to vector<4x32xf32>
    %25 = math.tanh %24 : vector<4x32xf32>
    %26 = vector.extract_strided_slice %11 {offsets = [0, 96], sizes = [4, 32], strides = [1, 1]} : vector<4x128xf32> to vector<4x32xf32>
    %27 = arith.negf %26 : vector<4x32xf32>
    %28 = math.exp %27 : vector<4x32xf32>
    %cst_13 = arith.constant 1.000000e+00 : f32
    %29 = vector.broadcast %cst_13 : f32 to vector<4x32xf32>
    %30 = arith.addf %29, %28 : vector<4x32xf32>
    %31 = arith.divf %29, %30 : vector<4x32xf32>
    %32 = arith.mulf %23, %6 : vector<4x32xf32>
    %33 = arith.mulf %17, %25 : vector<4x32xf32>
    %34 = arith.addf %32, %33 : vector<4x32xf32>
    %35 = math.tanh %34 : vector<4x32xf32>
    %36 = arith.mulf %31, %35 : vector<4x32xf32>
    %c0_14 = arith.constant 0 : index
    %c0_15 = arith.constant 0 : index
    %37 = vector.load %arg7[%c0_14, %c0_15] : memref<4x32xf32, #tpu.memory_space<vmem>>, vector<4x32xf32>
    tpu.vector_store %arg7[%c0_14, %c0_15], %34 {strides = array<i32>} : memref<4x32xf32, #tpu.memory_space<vmem>>, vector<4x32xf32>,
    %c0_16 = arith.constant 0 : index
    %c0_17 = arith.constant 0 : index
    %38 = vector.load %arg6[%c0_16, %c0_17] : memref<4x32xf32, #tpu.memory_space<vmem>>, vector<4x32xf32>
    tpu.vector_store %arg6[%c0_16, %c0_17], %36 {strides = array<i32>} : memref<4x32xf32, #tpu.memory_space<vmem>>, vector<4x32xf32>,
    %c0_18 = arith.constant 0 : index
    %c0_19 = arith.constant 0 : index
    %c0_20 = arith.constant 0 : index
    %39 = vector.load %arg5[%c0_18, %c0_19, %c0_20] : memref<1x4x32xf32, #tpu.memory_space<vmem>>, vector<1x4x32xf32>
    %40 = vector.shape_cast %39 : vector<1x4x32xf32> to vector<4x32xf32>
    %41 = vector.shape_cast %36 : vector<4x32xf32> to vector<1x4x32xf32>
    tpu.vector_store %arg5[%c0_18, %c0_19, %c0_20], %41 {strides = array<i32>} : memref<1x4x32xf32, #tpu.memory_space<vmem>>, vector<1x4x32xf32>,
    return
  }
  func.func @transform_0(%arg0: i32) -> (i32, i32, i32) {
    %c0_i32 = arith.constant 0 : i32
    %c0_i32_0 = arith.constant 0 : i32
    %c0_i32_1 = arith.constant 0 : i32
    return %arg0, %c0_i32, %c0_i32_0 : i32, i32, i32
  }
  func.func @transform_1(%arg0: i32) -> (i32, i32) {
    %c0_i32 = arith.constant 0 : i32
    %c0_i32_0 = arith.constant 0 : i32
    %c0_i32_1 = arith.constant 0 : i32
    return %c0_i32, %c0_i32_0 : i32, i32
  }
  func.func @transform_2(%arg0: i32) -> (i32, i32) {
    %c0_i32 = arith.constant 0 : i32
    %c0_i32_0 = arith.constant 0 : i32
    %c0_i32_1 = arith.constant 0 : i32
    return %c0_i32, %c0_i32_0 : i32, i32
  }
  func.func @transform_3(%arg0: i32) -> (i32, i32) {
    %c0_i32 = arith.constant 0 : i32
    %c0_i32_0 = arith.constant 0 : i32
    %c0_i32_1 = arith.constant 0 : i32
    return %c0_i32, %c0_i32_0 : i32, i32
  }
  func.func @transform_4(%arg0: i32) -> (i32, i32, i32) {
    %c0_i32 = arith.constant 0 : i32
    %c0_i32_0 = arith.constant 0 : i32
    %c0_i32_1 = arith.constant 0 : i32
    return %arg0, %c0_i32, %c0_i32_0 : i32, i32, i32
  }
  func.func @transform_5(%arg0: i32) -> (i32, i32) {
    %c0_i32 = arith.constant 0 : i32
    %c0_i32_0 = arith.constant 0 : i32
    %c0_i32_1 = arith.constant 0 : i32
    return %c0_i32, %c0_i32_0 : i32, i32
  }
  func.func @transform_6(%arg0: i32) -> (i32, i32) {
    %c0_i32 = arith.constant 0 : i32
    %c0_i32_0 = arith.constant 0 : i32
    %c0_i32_1 = arith.constant 0 : i32
    return %c0_i32, %c0_i32_0 : i32, i32
  }
}

</mosaic_0001>

<bundles_post_ra>
// kernel: tpu_custom_call.1
= control target key start
LH: loop header
LB: loop body
LE: loop exit
PB: predicated region body
PF: predicated region fallthrough
CT: control target
= control target key end

     0   :  { %12 = vsyncpa [#allocation3], 0  ;;  %s1332_s0 = inlined_call_operand.hbm [shape: f32[8,4,8], index: 0, kind: input, shape index: {}]   ;;  %s1333_s1 = inlined_call_operand.hbm [shape: f32[4,32], index: 1, kind: input, shape index: {}]   ;;  %s1334_s2 = inlined_call_operand.vmem [shape: f32[4,32], index: 2, kind: input, shape index: {}]   ;;  %s1335_s3 = inlined_call_operand.hbm [shape: f32[40,128], index: 3, kind: input, shape index: {}]   ;;  %s1336_s4 = inlined_call_operand.hbm [shape: f32[8,4,32], index: 4, kind: output, shape index: {0}]   ;;  %s1337_s5 = inlined_call_operand.hbm [shape: f32[4,32], index: 5, kind: output, shape index: {1}]   ;;  %s1338_s6 = inlined_call_operand.hbm [shape: f32[4,32], index: 6, kind: output, shape index: {2}]  }
   0x1   :  { %14 = vsyncpa [#allocation3 + $0x1], 0 }
   0x2   :  { %15 = vsyncpa [#allocation6], 0 }
   0x3   :  { %16 = vsyncpa [#allocation4], 0 }
   0x4   :  { %18 = vsyncpa [#allocation4 + $0x1], 0 }
   0x5   :  { %19 = vsyncpa [#allocation10], 0  ;;  %s1055_s21 = smov 0   ;;  %s1057_s22 = smov 0  }
   0x6   :  { %s1059_s23 = smov 0   ;;  %s1061_s24 = smov 0  }
   0x7 LB: > { %s1076_s25 = sadd.s32 4294967295, %s1004_s24   ;;  %s641_s26 = sadd.s32 4294967294, %s1004_s24   ;;  %s1004_s24 = sphi %s1061_s24, %s1366_s24   ;;  %s1000_s23 = sphi %s1059_s23, %s1365_s23   ;;  %s996_s22 = sphi %s1057_s22, %s1364_s22   ;;  %s992_s21 = sphi %s1055_s21, %s1363_s21  }
   0x8   : > { %p45_p0 = scmp.ne.s32.totalorder %s996_s22, %s992_s21  ;;  %p1339_p1 = scmp.eq.s32.totalorder %s1076_s25, 0 }
   0x9   : > { %p138_p3 = scmp.eq.s32.totalorder %s641_s26, 7  ;;  %p642_p5 = scmp.ge.s32.totalorder %s1004_s24, 1 }
   0xa   : > { %p1085_p4 = por %p1339_p1, %p45_p0  ;;  %p187_p7 = scmp.lt.s32.totalorder %s1004_s24, 9 }
   0xb   : > { %p1090_p6 = por %p138_p3, %p45_p0  ;;  %s1006_s30 = smov [#allocation5]  }
   0xc   : > { %s1342_s27 = scalar_select %p1085_p4, 1, 0 }
   0xd   : > { %s1343_s28 = scalar_select %p1090_p6, 1, 0 }
   0xe   : > { %p1096_p9 = pnand %p642_p5, %p187_p7  ;;  %s200_s7 = sshll.u32 %s1006_s30, 4  ;;  %s201_s7 = int_to_ptr.vmem [resolvable:$true] %s200_s7 }
   0xf   : > { %s1007_s8 = smov [#allocation7]   ;;  %s792_s13 = scalar_lea.hbm %s1333_s1, 64 }
  0x10   : > { %s1344_s29 = scalar_select %p1096_p9, 1, 0 }
  0x11   : > { %p715_p10 = pneg %p1096_p9  ;;  %s213_s9 = sshll.u32 %s1007_s8, 4  ;;  %s1108_s9 = int_to_ptr.vmem [resolvable:$true] %s213_s9 }
  0x12   : > { %p793_p12 = scmp.ne.s32.totalorder %s1333_s1, %s792_s13  ;;  %p799_p5 = scmp.lt.u32.totalorder %s792_s13, %s1333_s1 }
  0x13   : > { %p1104_p11 = pnand %p715_p10, %p1339_p1 }
  0x15   : > { %p794_p13 = pneg %p1104_p11 }
  0x17   : > { %p795_p0 = pnand %p794_p13, %p793_p12 }
  0x19   : > { %p796_p3 = pneg %p795_p0 }
  0x1b   : > { %p801_p7 = pnand %p799_p5, %p796_p3 }
  0x1d   : > { %804 = shalt.err (!%p801_p7)
}
  0x1e   : > { %s805_s18 = scalar_lea.vmem %s201_s7, 64  ;;  %p813_p2 = scmp.lt.s32.totalorder %s201_s7, %s201_s7 }
  0x1f   : > { %p806_p10 = scmp.ne.s32.totalorder %s201_s7, %s805_s18  ;;  %p814_p6 = scmp.lt.s32.totalorder %s805_s18, %s805_s18 }
  0x21   : > { %p808_p8 = pnand %p806_p10, %p794_p13  ;;  %p815_p4 = por %p814_p6, %p813_p2 }
  0x23   : > { %p809_p1 = pneg %p808_p8 }
  0x25   : > { %p816_p9 = pnand %p815_p4, %p809_p1 }
  0x27   : > { %819 = shalt.err (!%p816_p9)
}
  0x28   : > { %718 = dma.hbm_to_vmem [thread:$0]  (!%p1104_p11), %s1333_s1, 64, %s201_s7, [#allocation6]  }
  0x29   : > { %s820_s8 = scalar_lea.hbm %s1335_s3, 640 }
  0x2a   : > { %p821_p8 = scmp.ne.s32.totalorder %s1335_s3, %s820_s8  ;;  %p827_p4 = scmp.lt.u32.totalorder %s820_s8, %s1335_s3 }
  0x2c   : > { %p823_p2 = pnand %p821_p8, %p794_p13 }
  0x2e   : > { %p824_p1 = pneg %p823_p2 }
  0x30   : > { %p829_p6 = pnand %p827_p4, %p824_p1 }
  0x32   : > { %832 = shalt.err (!%p829_p6)
}
  0x33   : > { %s833_s7 = scalar_lea.vmem %s1108_s9, 640  ;;  %p841_p3 = scmp.lt.s32.totalorder %s1108_s9, %s1108_s9 }
  0x34   : > { %p834_p9 = scmp.ne.s32.totalorder %s1108_s9, %s833_s7  ;;  %p842_p5 = scmp.lt.s32.totalorder %s833_s7, %s833_s7 }
  0x36   : > { %p836_p12 = pnand %p834_p9, %p794_p13  ;;  %p843_p7 = por %p842_p5, %p841_p3 }
  0x38   : > { %p837_p0 = pneg %p836_p12 }
  0x3a   : > { %p844_p10 = pnand %p843_p7, %p837_p0 }
  0x3c   : > { %847 = shalt.err (!%p844_p10)
}
  0x3d   : > { %s1008_s15 = smov 128   ;;  %s1009_s16 = smov 8  }
  0x3e   : > { %721 = dma.hbm_to_vmem [thread:$0]  (!%p1104_p11), %s1335_s3, 640, %s1108_s9, [#allocation6], %s1008_s15, %s1008_s15, %s1009_s16  }
  0x3f   : > { %s1158_s19 = sadd.s32 1, %s1004_s24   ;;  %s32_s20 = sadd.s32 1, %s1000_s23 }
  0x40   : > { %s29_s26 = ssub.s32 %s1004_s24, %s1158_s19  ;;  %p39_p13 = scmp.ne.s32.totalorder %s1000_s23, %s996_s22 }
  0x41   : > { %p30_p8 = scmp.eq.s32.totalorder %s29_s26, 0  ;;  %p40_p2 = scmp.eq.s32.totalorder %s1004_s24, 0 }
  0x42   : > { %p1346_p1 = scmp.eq.s32.totalorder %s1076_s25, 7  ;;  %p732_p6 = scmp.lt.s32.totalorder %s1004_s24, 8 }
  0x43   : > { %s1174_s8 = scalar_select %p30_p8, %s1000_s23, %s32_s20  }
  0x44   : > { %p1168_p4 = por %p1346_p1, %p39_p13  ;;  %p41_p9 = por %p40_p2, %p39_p13 }
  0x45   : > { %s227_s10 = sand.u32 1, %s1000_s23   ;;  %s647_s9 = sshll.u32 %s1004_s24, 6 }
  0x46   : > { %s646_s11 = sshll.u32 %s227_s10, 2  ;;  %s1181_s14 = scalar_lea.hbm %s1332_s0, %s647_s9 }
  0x47   : > { %s231_s7 = scalar_lea.vmem [#allocation2], %s646_s11  ;;  %p1185_p11 = pnand %p732_p6, %p41_p9 }
  0x48   : > { %s238_s15 = sshll.u32 %s231_s7, 4  ;;  %s228_s17 = scalar_lea.sflag [#allocation3], %s227_s10  ;;  %s1183_s15 = int_to_ptr.vmem [resolvable:$true] %s238_s15 }
  0x49   : > { %s848_s18 = scalar_lea.hbm %s1181_s14, 64  ;;  %p850_p0 = pneg %p1185_p11 }
  0x4a   : > { %p849_p12 = scmp.ne.s32.totalorder %s1181_s14, %s848_s18  ;;  %s853_s11 = scalar_lea.hbm %s1332_s0, 512 }
  0x4b   : > { %p854_p7 = scmp.lt.u32.totalorder %s1181_s14, %s1332_s0  ;;  %p855_p10 = scmp.lt.u32.totalorder %s853_s11, %s848_s18 }
  0x4c   : > { %p851_p3 = pnand %p850_p0, %p849_p12  ;;  %p857_p8 = scmp.lt.u32.totalorder %s848_s18, %s1181_s14 }
  0x4d   : > { %p856_p13 = por %p855_p10, %p854_p7 }
  0x4e   : > { %p852_p5 = pneg %p851_p3 }
  0x4f   : > { %p858_p2 = por %p857_p8, %p856_p13 }
  0x51   : > { %p859_p1 = pnand %p858_p2, %p852_p5 }
  0x53   : > { %862 = shalt.err (!%p859_p1)
}
  0x54   : > { %s863_s10 = scalar_lea.vmem %s1183_s15, 64  ;;  %s1010_s13 = smov [#allocation2]  }
  0x55   : > { %p864_p6 = scmp.ne.s32.totalorder %s1183_s15, %s863_s10  ;;  %s868_s7 = sshll.u32 %s1010_s13, 4  ;;  %s869_s7 = int_to_ptr.vmem [resolvable:$false] %s868_s7 }
  0x56   : > { %s870_s20 = scalar_lea.vmem %s869_s7, 128  ;;  %p871_p3 = scmp.lt.s32.totalorder %s1183_s15, %s869_s7 }
  0x57   : > { %p866_p9 = pnand %p864_p6, %p850_p0  ;;  %p872_p7 = scmp.lt.s32.totalorder %s870_s20, %s863_s10 }
  0x59   : > { %p867_p12 = pneg %p866_p9  ;;  %p873_p10 = por %p872_p7, %p871_p3 }
  0x5b   : > { %p874_p13 = pnand %p873_p10, %p867_p12 }
  0x5d   : > { %877 = shalt.err (!%p874_p13)
}
  0x5e   : > { %725 = dma.hbm_to_vmem [thread:$0]  (!%p1185_p11), %s1181_s14, 64, %s1183_s15, %s228_s17  }
  0x5f   : > { %p1349_p5 = scmp.ne.s32.totalorder %s1344_s29, 0 }
  0x60   : > { %s1217_s18 = sand.u32 (!%p1349_p5), 1, %s996_s22   ;;  %p1350_p0 = scmp.ne.s32.totalorder (!%p1349_p5), %s1342_s27, 0 }
  0x61   : > { %247 = sbr.rel (%p1349_p5) target bundleno = 891 (0x37b), region = 36  ;;  %s649_s26 = sshll.u32 (!%p1349_p5), %s1217_s18, 2 }
  0x62   : > { %s250_s11 = scalar_lea.sflag (!%p1349_p5), [#allocation3], %s1217_s18  ;;  %s253_s9 = scalar_lea.vmem (!%p1349_p5), [#allocation2], %s649_s26 }
  0x68   : > { %975 = dma.done.wait (%p1350_p0), %s250_s11, 64  }
  0x69   : > { %977 = vsyncadd (%p1350_p0), %s250_s11, 4294967232  ;;  %p1351_p8 = scmp.eq.s32.totalorder %s1076_s25, 0 }
  0x6b   : > { %979 = dma.done.wait (%p1351_p8), [#allocation6], 704   ;;  %p1352_p11 = pmov %p1351_p8 }
  0x6c   : > { %s1229_s29 = scalar_lea.vmem [#allocation8], %s649_s26  ;;  %p1353_p2 = scmp.ne.s32.totalorder %s1076_s25, 0 }
  0x6d   : > { %981 = vsyncadd (%p1352_p11), [#allocation6], 4294966592  ;;  %v294_v0 = vld [vmem:[#allocation5] sm:$0xf] (!%p1353_p2)  ;;  %vm295_vm0 = vcmask (!%p1353_p2), 257024  }
  0x6e   : > { %293 = sbr.rel (%p1353_p2) target bundleno = 117 (0x75), region = 52  ;;  %v297_v1 = vld [vmem:[%s1334_s2] sm:$0xf] (!%p1353_p2)  ;;  %296 = vst.msk [vmem:[#allocation9] sm:$0xf] (!%p1353_p2), %vm295_vm0, %v294_v0 }
  0x6f   : > { %298 = vst.msk [vmem:[#allocation11] sm:$0xf] (!%p1353_p2), %vm295_vm0, %v297_v1 }
  0x75 PF: > { %v303_v2 = vld [vmem:[#allocation7 + $0x8] sm:$0xff]  ;;  %v304_v3 = vld [vmem:[#allocation7 + $0x10] sm:$0xff]  ;;  %v305_v4 = vld [vmem:[#allocation7 + $0x18] sm:$0xff]  ;;  %v1011_v5 = vmov 0.0|0.0   ;;  %v1012_v8 = vmov 0.0   ;;  %vm381_vm1 = vcmask 64512  }
  0x76   : > { %688 = vmatprep.subr.bf16.mxu1 %v1011_v5  ;;  %v689_v6 = vpack.c.bf16 %v304_v3, %v303_v2  ;;  %v306_v7 = vld [vmem:[#allocation7 + $0x20] sm:$0xff]  ;;  %683 = vmatprep.subr.mxu0 %v1012_v8  ;;  %v299_v10 = vld [vmem:[%s253_s9] sm:$0xf]  ;;  %vm1013_vm2 = vmmov 0   ;;  %v300_v12 = vld [vmem:[#allocation9] sm:$0xf] }
  0x77   : > { %v302_v9 = vld [vmem:[#allocation7] sm:$0xff]  ;;  %685 = vmatprep.mubr.msk.f32.mxu0 %vm1013_vm2, %v1012_v8  ;;  %v692_v11 = vpack.c.bf16 %v306_v7, %v305_v4  ;;  %680 = vmatprep.mubr.msk.f32.mxu1 %vm1013_vm2, %v1012_v8  ;;  %vm307_vm3 = vcmask 261120   ;;  %s1014_s27 = smov 64   ;;  %v301_v19 = vld [vmem:[#allocation11] sm:$0xf]  ;;  %s1015_s16 = smov 32  }
  0x78   : > { %684 = vmatpush3.msra.mxu0 %v302_v9  ;;  %690 = vmatpush3.bf16.msra.mxu1 %v689_v6  ;;  %s1016_s17 = smov 96   ;;  %vm487_vm4 = vcmask 257024   ;;  %s1017_s12 = smov [#allocation9]  }
  0x79   : > { %691 = vmatprep.subr.bf16.mxu1 %v1011_v5  ;;  %686 = vmatmul.mubr.msk.f32.vlgmr.msra.gmra.mrb[0].mxu0 %vm381_vm1, %v299_v10  ;;  %s520_s10 = sshll.u32 %s1017_s12, 4  ;;  %s658_s13 = sshll.u32 %s1076_s25, 6  ;;  %s521_s10 = int_to_ptr.vmem [resolvable:$true] %s520_s10 }
  0x7a   : > { %s509_s7 = sshll.u32 %s1229_s29, 4  ;;  %s1018_s20 = smov [#allocation11]   ;;  %s1243_s7 = int_to_ptr.vmem [resolvable:$true] %s509_s7 }
  0x7b   : > { %s531_s26 = sshll.u32 %s1018_s20, 4  ;;  %s1241_s14 = scalar_lea.hbm %s1336_s4, %s658_s13  ;;  %s1246_s26 = int_to_ptr.vmem [resolvable:$true] %s531_s26 }
  0x7c   : > { %693 = vmatpush3.bf16.msra.mxu1 %v692_v11  ;;  %s878_s15 = scalar_lea.vmem %s521_s10, 64  ;;  %p1354_p6 = scmp.eq.s32.totalorder %s1076_s25, 7 }
  0x7d   : > { %p879_p1 = scmp.ne.s32.totalorder %s521_s10, %s878_s15  ;;  %p885_p3 = scmp.lt.s32.totalorder %s521_s10, %s521_s10 }
  0x7e   : > { %p886_p7 = scmp.lt.s32.totalorder %s878_s15, %s878_s15 }
  0x7f   : > { %681 = vmatmul.mubr.msk.f32.vlgmr.msra.gmra.mrb[0].mxu1 %vm307_vm3, %v300_v12  ;;  %p880_p9 = pnand %p879_p1, %p1354_p6 }
  0x80   : > { %p887_p10 = por %p886_p7, %p885_p3 }
  0x81   : > { %p881_p12 = pneg %p880_p9 }
  0x83   : > { %p888_p13 = pnand %p887_p10, %p881_p12 }
 0x14c   : > { %v451_v13 = vpop.f32.mrb[0].mxu0 }
 0x14d   : > { %v687_v14 = vpop.f32.mrb[1].mxu0 }
 0x152   : > { %v377_v15 = vpop.f32.mrb[0].mxu1 }
 0x153   : > { %v452_v16 = vadd.f32 %v451_v13, %v377_v15  ;;  %v682_v17 = vpop.f32.mrb[1].mxu1 }
 0x155   : > { %784 = vtanh.f32 %v452_v16  ;;  %v656_v20 = vmul.f32 -1.442695, %v452_v16 }
 0x157   : > { %786 = vpow2.f32 %v656_v20 }
 0x15f   : > { %v785_v18 = vpop.eup %784 }
 0x160   : > { %468 = vrot.lane.b32.xlu0 %v785_v18, %s1014_s27 }
 0x161   : > { %v787_v21 = vpop.eup %786 }
 0x162   : > { %v458_v22 = vadd.f32 1.0, %v787_v21 }
 0x164   : > { %463 = vrot.lane.b32.xlu0 %v301_v19, %s1015_s16  ;;  %788 = vrcp.f32 %v458_v22 }
 0x16e   : > { %v789_v23 = vpop.eup %788 }
 0x1d2   : > { %v469_v24 = vpop.permute.xlu0 %468 }
 0x1d3   : > { %v471_v25 = vmul.f32 %v789_v23, %v469_v24 }
 0x1d5   : > { %473 = vrot.lane.b32.xlu1 %v471_v25, %s1015_s16 }
 0x1d6   : > { %v464_v26 = vpop.permute.xlu0 %463 }
 0x1d7   : > { %v466_v27 = vmul.f32 %v789_v23, %v464_v26 }
 0x247   : > { %v474_v28 = vpop.permute.xlu1 %473 }
 0x248   : > { %v476_v29 = vadd.f32 %v474_v28, %v466_v27 }
 0x24a   : > { %790 = vtanh.f32 %v476_v29 }
 0x254   : > { %v791_v30 = vpop.eup %790 }
 0x255   : > { %479 = vrot.lane.b32.xlu1 %v791_v30, %s1014_s27 }
 0x259   : > { %484 = vrot.lane.b32.xlu1 %v476_v29, %s1016_s17 }
 0x2c7   : > { %v480_v31 = vpop.permute.xlu1 %479 }
 0x2c8   : > { %v482_v32 = vmul.f32 %v789_v23, %v480_v31 }
 0x2ca   : > { %490 = vrot.lane.b32.xlu0 %v482_v32, %s1015_s16 }
 0x2cb   : > { %v485_v33 = vpop.permute.xlu1 %484 }
 0x2cc   : > { %488 = vst.msk [vmem:[#allocation11] sm:$0xf] %vm487_vm4, %v485_v33 }
 0x33c   : > { %v491_v34 = vpop.permute.xlu0 %490 }
 0x33d   : > { %494 = vst.msk [vmem:[%s1229_s29] sm:$0xf] %vm487_vm4, %v491_v34  ;;  %493 = vst.msk [vmem:[#allocation9] sm:$0xf] %vm487_vm4, %v491_v34 }
 0x33e   : > { %891 = shalt.err (!%p888_p13)
}
 0x33f   : > { %s892_s17 = scalar_lea.hbm %s1337_s5, 64  ;;  %p1355_p0 = pmov %p1354_p6 }
 0x340   : > { %p893_p5 = scmp.ne.s32.totalorder %s1337_s5, %s892_s17  ;;  %p898_p2 = scmp.lt.u32.totalorder %s892_s17, %s1337_s5 }
 0x342   : > { %p894_p8 = pnand %p893_p5, %p1355_p0 }
 0x344   : > { %p895_p11 = pneg %p894_p8 }
 0x346   : > { %p900_p1 = pnand %p898_p2, %p895_p11 }
 0x348   : > { %903 = shalt.err (!%p900_p1)
}
 0x349   : > { %p1356_p6 = pmov %p1355_p0  ;;  %s496_s15 = scalar_lea.sflag [#allocation4], %s1217_s18 }
 0x34a   : > { %s904_s27 = scalar_lea.vmem %s1243_s7, 64  ;;  %s1019_s16 = smov [#allocation8]  }
 0x34b   : > { %707 = dma.vmem_to_hbm [thread:$0]  (%p1356_p6), %s521_s10, 64, %s1337_s5, [#allocation10]  }
 0x34c   : > { %p905_p9 = scmp.ne.s32.totalorder %s1243_s7, %s904_s27  ;;  %s908_s17 = sshll.u32 %s1019_s16, 4  ;;  %s909_s17 = int_to_ptr.vmem [resolvable:$false] %s908_s17 }
 0x34d   : > { %s910_s12 = scalar_lea.vmem %s909_s17, 128  ;;  %p911_p7 = scmp.lt.s32.totalorder %s1243_s7, %s909_s17 }
 0x34e   : > { %p906_p12 = pnand %p905_p9, %p1168_p4  ;;  %p912_p10 = scmp.lt.s32.totalorder %s910_s12, %s904_s27 }
 0x350   : > { %p907_p3 = pneg %p906_p12  ;;  %p913_p13 = por %p912_p10, %p911_p7 }
 0x352   : > { %p914_p5 = pnand %p913_p13, %p907_p3 }
 0x354   : > { %917 = shalt.err (!%p914_p5)
}
 0x355   : > { %s918_s18 = scalar_lea.hbm %s1241_s14, 64  ;;  %s922_s13 = scalar_lea.hbm %s1336_s4, 512 }
 0x356   : > { %p919_p0 = scmp.ne.s32.totalorder %s1241_s14, %s918_s18  ;;  %p923_p2 = scmp.lt.u32.totalorder %s1241_s14, %s1336_s4 }
 0x357   : > { %p924_p1 = scmp.lt.u32.totalorder %s922_s13, %s918_s18  ;;  %p926_p9 = scmp.lt.u32.totalorder %s918_s18, %s1241_s14 }
 0x358   : > { %p920_p8 = pnand %p919_p0, %p1168_p4 }
 0x359   : > { %p925_p6 = por %p924_p1, %p923_p2 }
 0x35a   : > { %p921_p11 = pneg %p920_p8 }
 0x35b   : > { %p927_p12 = por %p926_p9, %p925_p6 }
 0x35d   : > { %p928_p3 = pnand %p927_p12, %p921_p11 }
 0x35f   : > { %931 = shalt.err (!%p928_p3)
}
 0x360   : > { %705 = dma.vmem_to_hbm [thread:$0]  (%p1168_p4), %s1243_s7, 64, %s1241_s14, %s496_s15  }
 0x361   : > { %s932_s9 = scalar_lea.vmem %s1246_s26, 64  ;;  %p1357_p10 = scmp.eq.s32.totalorder %s1076_s25, 7 }
 0x362   : > { %p933_p7 = scmp.ne.s32.totalorder %s1246_s26, %s932_s9  ;;  %p939_p0 = scmp.lt.s32.totalorder %s1246_s26, %s1246_s26 }
 0x363   : > { %p940_p8 = scmp.lt.s32.totalorder %s932_s9, %s932_s9 }
 0x364   : > { %p934_p13 = pnand %p933_p7, %p1357_p10 }
 0x365   : > { %p941_p2 = por %p940_p8, %p939_p0 }
 0x366   : > { %p935_p5 = pneg %p934_p13 }
 0x368   : > { %p942_p11 = pnand %p941_p2, %p935_p5 }
 0x36a   : > { %945 = shalt.err (!%p942_p11)
}
 0x36b   : > { %s946_s16 = scalar_lea.hbm %s1338_s6, 64  ;;  %p1358_p1 = pmov %p1357_p10 }
 0x36c   : > { %p947_p4 = scmp.ne.s32.totalorder %s1338_s6, %s946_s16  ;;  %p952_p12 = scmp.lt.u32.totalorder %s946_s16, %s1338_s6 }
 0x36e   : > { %p948_p6 = pnand %p947_p4, %p1358_p1 }
 0x370   : > { %p949_p9 = pneg %p948_p6 }
 0x372   : > { %p954_p3 = pnand %p952_p12, %p949_p9 }
 0x374   : > { %957 = shalt.err (!%p954_p3)
}
 0x375   : > { %p1359_p7 = pmov %p1358_p1  ;;  %p1360_p10 = pmov %p1358_p1 }
 0x377   : > { %709 = dma.vmem_to_hbm [thread:$0]  (%p1359_p7), %s1246_s26, 64, %s1338_s6, [#allocation10]  }
 0x378   : > { %983 = dma.done.wait (%p1360_p10), [#allocation10], 128   ;;  %p1361_p13 = pmov %p1358_p1 }
 0x37a   : > { %985 = vsyncadd (%p1361_p13), [#allocation10], 4294967168 }
 0x37b PF: > { %p739_p5 = scmp.ge.s32.totalorder %s1004_s24, 2  ;;  %s551_s10 = sand.u32 1, %s992_s21  }
 0x37c   : > { %p1362_p0 = scmp.ne.s32.totalorder %s1343_s28, 0  ;;  %s552_s29 = scalar_lea.sflag [#allocation4], %s551_s10 }
 0x37e   : > { %p727_p8 = pnand %p739_p5, %p1362_p0 }
 0x380   : > { %987 = dma.done.wait (!%p727_p8), %s552_s29, 64  }
 0x381   : > { %989 = vsyncadd (!%p727_p8), %s552_s29, 4294967232  ;;  %p22_p2 = scmp.ge.s32.totalorder %s1158_s19, 10   ;;  %s1363_s21 = smov %s996_s22 }
 0x382   : > { %s1364_s22 = smov %s1000_s23  ;;  %s1365_s23 = smov %s1174_s8 }
 0x383   : > { %s1366_s24 = smov %s1158_s19  ;;  %24 = sbr.rel (!%p22_p2) target bundleno = 7 (0x7), region = 109 }
 0x38a   :  { %557 = vsyncpa [#allocation3], 1 }
 0x38b   :  { %559 = vsyncpa [#allocation3 + $0x1], 1 }
 0x38c   :  { %560 = vsyncpa [#allocation6], 1 }
 0x38d   :  { %561 = vsyncpa [#allocation4], 1 }
 0x38e   :  { %563 = vsyncpa [#allocation4 + $0x1], 1 }
 0x38f   :  { %564 = vsyncpa [#allocation10], 1 }

</bundles_post_ra>
